<compile_context>
chip_gen: v5e
topology: v5e:2x2
jax: 0.10.0
libtpu: 0.0.40
codegen_flags: <defaults>
</compile_context>

<pallas_src>
import math

import jax
import jax.numpy as jnp
from jax.experimental import pallas as pl
from jax.experimental.pallas import tpu as pltpu

IN_FEATURES = 10
D = 5          # shared hidden / output feature dim (see TODO above)
D_PAD = 128    # lane-dense padded feature dim (one vreg of lanes per half)
W_COLS = 2 * D_PAD  # lanes 0..127 -> W1 (v1), lanes 128..255 -> W1@W2 (v2)


def _model_kernel(x_ref, w_ref, out_ref):
    """Single-block kernel; runs once (no grid, no pipeline).

    x_ref   : SMEM (K,) f32      -- input row as scalars
    w_ref   : VMEM (K+1, 256) f32 -- rows 0..K-1 = [W1 | W1@W2] (zero-padded to
                                     128 lanes each half); row K = [b1 | b1@W2+b2]
    out_ref : VMEM (1, 128) f32  -- lane-dense output; cols 0..D-1 valid
    """
    # Augmented GEMV on the VPU: start from the bias row, then K scalar*vector
    # FMAs (scalar operands lane-broadcast for free).  Both v1 and v2 are
    # produced in one sweep over the concatenated 256-lane accumulator.
    acc = w_ref[IN_FEATURES:IN_FEATURES + 1, :]            # (1, 256) bias row
    for k in range(IN_FEATURES):                           # static unroll, K=10
        acc = acc + x_ref[k] * w_ref[k:k + 1, :]

    v1 = acc[:, :D_PAD]    # (1, 128)  layer-1 output
    v2 = acc[:, D_PAD:]    # (1, 128)  fused layer-2 output

    # v3 = relu(v2) - 1.5 ; v4 = relu(v3) - 2.0 ; v5 = v4 * 6.5
    # constants folded:  v5 = relu(relu(v2) - 1.5) * 6.5 - 13.0
    v5 = jnp.maximum(jnp.maximum(v2, 0.0) - 1.5, 0.0) * 6.5 - 13.0

    # v6 = v1 / sigmoid(v5)  ==  v1 * (1 + exp(-v5))
    v6 = v1 * (1.0 + jnp.exp(-v5))

    # v7 = v6 % x2 is dead code in the reference -> dropped (x2 never enters
    # the kernel).  Padded lanes: v1 == 0 exactly, so v8 == 0 there even though
    # exp(-v5) is large; no inf/nan.
    out_ref[...] = (v1 * v6).astype(out_ref.dtype)          # v8


def prepare_params(w1, b1, w2, b2):
    """One-time prep: fuse layer 2 into x1-space, fold biases in as an extra
    row, pad each half to 128 lanes, and concatenate the halves along lanes."""
    w12 = w1 @ w2          # (K, D)
    b12 = b1 @ w2 + b2     # (1, D)

    a1 = jnp.concatenate([w1, b1], axis=0)      # (K+1, D)
    a12 = jnp.concatenate([w12, b12], axis=0)   # (K+1, D)

    def pad_lanes(a):
        return jnp.pad(a, ((0, 0), (0, D_PAD - a.shape[1])))

    return jnp.concatenate([pad_lanes(a1), pad_lanes(a12)], axis=1)  # (K+1, 256)


@jax.jit
def model_forward(x1, x2, w_aug):
    """x2 only feeds dead code (v7) in the reference forward -> unused."""
    del x2
    out = pl.pallas_call(
        _model_kernel,
        out_shape=jax.ShapeDtypeStruct((1, D_PAD), jnp.float32),
        in_specs=[
            pl.BlockSpec(memory_space=pltpu.MemorySpace.SMEM),   # x1 scalars
            pl.BlockSpec(memory_space=pltpu.MemorySpace.VMEM),   # augmented weights
        ],
        out_specs=pl.BlockSpec(memory_space=pltpu.MemorySpace.VMEM),
    )(x1.reshape(IN_FEATURES), w_aug)
    return out[:, :D]


def init_params(key):
    """Deterministic PyTorch-style Linear init: U(-1/sqrt(fan_in), 1/sqrt(fan_in))."""
    k1, k2, k3, k4 = jax.random.split(key, 4)
    bound1 = 1.0 / math.sqrt(IN_FEATURES)
    bound2 = 1.0 / math.sqrt(D)
    # weights stored transposed vs PyTorch: (in_features, out_features)
    w1 = jax.random.uniform(k1, (IN_FEATURES, D), jnp.float32, -bound1, bound1)
    b1 = jax.random.uniform(k2, (1, D), jnp.float32, -bound1, bound1)
    w2 = jax.random.uniform(k3, (D, D), jnp.float32, -bound2, bound2)
    b2 = jax.random.uniform(k4, (1, D), jnp.float32, -bound2, bound2)
    return w1, b1, w2, b2


def reference_forward(x1, x2, w1, b1, w2, b2):
    """Pure-JAX reference matching the (shape-fixed) PyTorch forward."""
    v1 = x1 @ w1 + b1
    v2 = v1 @ w2 + b2
    v3 = jnp.maximum(v2, 0.0) - 1.5
    v4 = jnp.maximum(v3, 0.0) - 2.0
    v5 = v4 * 6.5
    v6 = v1 / jax.nn.sigmoid(v5)
    _ = jnp.mod(v6, x2)  # dead code, kept only in the reference
    return v1 * v6


if __name__ == "__main__":
    key = jax.random.PRNGKey(0)
    kp, kx1, kx2 = jax.random.split(key, 3)

    w1, b1, w2, b2 = init_params(kp)
    x1 = jax.random.normal(kx1, (1, IN_FEATURES), jnp.float32)
    x2 = jax.random.normal(kx2, (1, D), jnp.float32)

    w_aug = prepare_params(w1, b1, w2, b2)
    out = jax.block_until_ready(model_forward(x1, x2, w_aug))

    ref = reference_forward(x1, x2, w1, b1, w2, b2)
    assert out.shape == (1, D)
    assert jnp.allclose(out, ref, atol=1e-4, rtol=1e-4), (out, ref)

    print("KERNEL_OK")
</pallas_src>

<mosaic_0001>
module attributes {stable_mosaic.version = 11 : i64} {
  func.func @_model_kernel(%arg0: memref<10xf32, #tpu.memory_space<smem>>, %arg1: memref<11x256xf32, #tpu.memory_space<vmem>>, %arg2: memref<1x128xf32, #tpu.memory_space<vmem>>) attributes {dimension_semantics = [], scalar_prefetch = 0 : i64, scratch_operands = 0 : i64, tpu.core_type = #tpu.core_type<tc>} {
    %c10 = arith.constant 10 : index
    %c0 = arith.constant 0 : index
    %0 = vector.load %arg1[%c10, %c0] : memref<11x256xf32, #tpu.memory_space<vmem>>, vector<1x256xf32>
    %c0_0 = arith.constant 0 : index
    %1 = memref.load %arg0[%c0_0] : memref<10xf32, #tpu.memory_space<smem>>
    %c0_1 = arith.constant 0 : index
    %c0_2 = arith.constant 0 : index
    %2 = vector.load %arg1[%c0_1, %c0_2] : memref<11x256xf32, #tpu.memory_space<vmem>>, vector<1x256xf32>
    %3 = vector.broadcast %1 : f32 to vector<1x256xf32>
    %4 = arith.mulf %3, %2 : vector<1x256xf32>
    %5 = arith.addf %0, %4 : vector<1x256xf32>
    %c1 = arith.constant 1 : index
    %6 = memref.load %arg0[%c1] : memref<10xf32, #tpu.memory_space<smem>>
    %c1_3 = arith.constant 1 : index
    %c0_4 = arith.constant 0 : index
    %7 = vector.load %arg1[%c1_3, %c0_4] : memref<11x256xf32, #tpu.memory_space<vmem>>, vector<1x256xf32>
    %8 = vector.broadcast %6 : f32 to vector<1x256xf32>
    %9 = arith.mulf %8, %7 : vector<1x256xf32>
    %10 = arith.addf %5, %9 : vector<1x256xf32>
    %c2 = arith.constant 2 : index
    %11 = memref.load %arg0[%c2] : memref<10xf32, #tpu.memory_space<smem>>
    %c2_5 = arith.constant 2 : index
    %c0_6 = arith.constant 0 : index
    %12 = vector.load %arg1[%c2_5, %c0_6] : memref<11x256xf32, #tpu.memory_space<vmem>>, vector<1x256xf32>
    %13 = vector.broadcast %11 : f32 to vector<1x256xf32>
    %14 = arith.mulf %13, %12 : vector<1x256xf32>
    %15 = arith.addf %10, %14 : vector<1x256xf32>
    %c3 = arith.constant 3 : index
    %16 = memref.load %arg0[%c3] : memref<10xf32, #tpu.memory_space<smem>>
    %c3_7 = arith.constant 3 : index
    %c0_8 = arith.constant 0 : index
    %17 = vector.load %arg1[%c3_7, %c0_8] : memref<11x256xf32, #tpu.memory_space<vmem>>, vector<1x256xf32>
    %18 = vector.broadcast %16 : f32 to vector<1x256xf32>
    %19 = arith.mulf %18, %17 : vector<1x256xf32>
    %20 = arith.addf %15, %19 : vector<1x256xf32>
    %c4 = arith.constant 4 : index
    %21 = memref.load %arg0[%c4] : memref<10xf32, #tpu.memory_space<smem>>
    %c4_9 = arith.constant 4 : index
    %c0_10 = arith.constant 0 : index
    %22 = vector.load %arg1[%c4_9, %c0_10] : memref<11x256xf32, #tpu.memory_space<vmem>>, vector<1x256xf32>
    %23 = vector.broadcast %21 : f32 to vector<1x256xf32>
    %24 = arith.mulf %23, %22 : vector<1x256xf32>
    %25 = arith.addf %20, %24 : vector<1x256xf32>
    %c5 = arith.constant 5 : index
    %26 = memref.load %arg0[%c5] : memref<10xf32, #tpu.memory_space<smem>>
    %c5_11 = arith.constant 5 : index
    %c0_12 = arith.constant 0 : index
    %27 = vector.load %arg1[%c5_11, %c0_12] : memref<11x256xf32, #tpu.memory_space<vmem>>, vector<1x256xf32>
    %28 = vector.broadcast %26 : f32 to vector<1x256xf32>
    %29 = arith.mulf %28, %27 : vector<1x256xf32>
    %30 = arith.addf %25, %29 : vector<1x256xf32>
    %c6 = arith.constant 6 : index
    %31 = memref.load %arg0[%c6] : memref<10xf32, #tpu.memory_space<smem>>
    %c6_13 = arith.constant 6 : index
    %c0_14 = arith.constant 0 : index
    %32 = vector.load %arg1[%c6_13, %c0_14] : memref<11x256xf32, #tpu.memory_space<vmem>>, vector<1x256xf32>
    %33 = vector.broadcast %31 : f32 to vector<1x256xf32>
    %34 = arith.mulf %33, %32 : vector<1x256xf32>
    %35 = arith.addf %30, %34 : vector<1x256xf32>
    %c7 = arith.constant 7 : index
    %36 = memref.load %arg0[%c7] : memref<10xf32, #tpu.memory_space<smem>>
    %c7_15 = arith.constant 7 : index
    %c0_16 = arith.constant 0 : index
    %37 = vector.load %arg1[%c7_15, %c0_16] : memref<11x256xf32, #tpu.memory_space<vmem>>, vector<1x256xf32>
    %38 = vector.broadcast %36 : f32 to vector<1x256xf32>
    %39 = arith.mulf %38, %37 : vector<1x256xf32>
    %40 = arith.addf %35, %39 : vector<1x256xf32>
    %c8 = arith.constant 8 : index
    %41 = memref.load %arg0[%c8] : memref<10xf32, #tpu.memory_space<smem>>
    %c8_17 = arith.constant 8 : index
    %c0_18 = arith.constant 0 : index
    %42 = vector.load %arg1[%c8_17, %c0_18] : memref<11x256xf32, #tpu.memory_space<vmem>>, vector<1x256xf32>
    %43 = vector.broadcast %41 : f32 to vector<1x256xf32>
    %44 = arith.mulf %43, %42 : vector<1x256xf32>
    %45 = arith.addf %40, %44 : vector<1x256xf32>
    %c9 = arith.constant 9 : index
    %46 = memref.load %arg0[%c9] : memref<10xf32, #tpu.memory_space<smem>>
    %c9_19 = arith.constant 9 : index
    %c0_20 = arith.constant 0 : index
    %47 = vector.load %arg1[%c9_19, %c0_20] : memref<11x256xf32, #tpu.memory_space<vmem>>, vector<1x256xf32>
    %48 = vector.broadcast %46 : f32 to vector<1x256xf32>
    %49 = arith.mulf %48, %47 : vector<1x256xf32>
    %50 = arith.addf %45, %49 : vector<1x256xf32>
    %51 = vector.extract_strided_slice %50 {offsets = [0, 0], sizes = [1, 128], strides = [1, 1]} : vector<1x256xf32> to vector<1x128xf32>
    %52 = vector.extract_strided_slice %50 {offsets = [0, 128], sizes = [1, 128], strides = [1, 1]} : vector<1x256xf32> to vector<1x128xf32>
    %cst = arith.constant 0.000000e+00 : f32
    %53 = vector.broadcast %cst : f32 to vector<1x128xf32>
    %54 = arith.maximumf %52, %53 : vector<1x128xf32>
    %cst_21 = arith.constant 1.500000e+00 : f32
    %55 = vector.broadcast %cst_21 : f32 to vector<1x128xf32>
    %56 = arith.subf %54, %55 : vector<1x128xf32>
    %cst_22 = arith.constant 0.000000e+00 : f32
    %57 = vector.broadcast %cst_22 : f32 to vector<1x128xf32>
    %58 = arith.maximumf %56, %57 : vector<1x128xf32>
    %cst_23 = arith.constant 6.500000e+00 : f32
    %59 = vector.broadcast %cst_23 : f32 to vector<1x128xf32>
    %60 = arith.mulf %58, %59 : vector<1x128xf32>
    %cst_24 = arith.constant 1.300000e+01 : f32
    %61 = vector.broadcast %cst_24 : f32 to vector<1x128xf32>
    %62 = arith.subf %60, %61 : vector<1x128xf32>
    %cst_25 = arith.constant 0.000000e+00 : f32
    %63 = vector.broadcast %cst_25 : f32 to vector<1x128xf32>
    %64 = arith.subf %63, %62 : vector<1x128xf32>
    %65 = math.exp %64 : vector<1x128xf32>
    %cst_26 = arith.constant 1.000000e+00 : f32
    %66 = vector.broadcast %cst_26 : f32 to vector<1x128xf32>
    %67 = arith.addf %66, %65 : vector<1x128xf32>
    %68 = arith.mulf %51, %67 : vector<1x128xf32>
    %69 = arith.mulf %51, %68 : vector<1x128xf32>
    %c0_27 = arith.constant 0 : index
    %c0_28 = arith.constant 0 : index
    %70 = vector.load %arg2[%c0_27, %c0_28] : memref<1x128xf32, #tpu.memory_space<vmem>>, vector<1x128xf32>
    tpu.vector_store %arg2[%c0_27, %c0_28], %69 {strides = array<i32>} : memref<1x128xf32, #tpu.memory_space<vmem>>, vector<1x128xf32>,
    return
  }
}

</mosaic_0001>

<bundles_post_ra>
// kernel: model_forward.1
= control target key start
LH: loop header
LB: loop body
LE: loop exit
PB: predicated region body
PF: predicated region fallthrough
CT: control target
= control target key end

     0   :  { %7 = vsyncpa [#allocation5], 0  ;;  %s248_s0 = inlined_call_operand.hbm [shape: f32[10], index: 0, kind: input, shape index: {}]   ;;  %s249_s1 = inlined_call_operand.hbm [shape: f32[11,256], index: 1, kind: input, shape index: {}]   ;;  %s250_s2 = inlined_call_operand.hbm [shape: f32[1,128], index: 2, kind: output, shape index: {}]  }
   0x1   :  { %8 = vsyncpa [#allocation3], 0 }
   0x2   :  { %9 = vsyncpa [#allocation4], 0  ;;  %s15_s11 = sshll.u32 %s248_s0, 4  ;;  %s23_s14 = sshll.u32 %s249_s1, 4  ;;  %s16_s11 = int_to_ptr.hbm [resolvable:$true] %s15_s11  ;;  %s24_s14 = int_to_ptr.hbm [resolvable:$true] %s23_s14 }
   0x3   :  { %s219_s15 = smov [#allocation2]   ;;  %s220_s16 = smov [#allocation6]  }
   0x4   :  { %18 = dma.hbm_to_smem %s16_s11, 16, %s219_s15, [#allocation5]  }
   0x5   :  { %s25_s17 = sshll.u32 %s220_s16, 4  ;;  %s221_s18 = smov 256   ;;  %s26_s17 = int_to_ptr.vmem [resolvable:$true] %s25_s17 }
   0x6   :  { %s222_s19 = smov 16  }
   0x7   :  { %31 = dma.hbm_to_vmem [thread:$0]  %s24_s14, 512, %s26_s17, [#allocation3], %s221_s18, %s221_s18, %s222_s19  }
   0x8   :  { %213 = dma.done.wait [#allocation5], 16  }
   0x9   :  { %214 = vsyncadd [#allocation5], 4294967280 }
   0xa   :  { %215 = dma.done.wait [#allocation3], 512  }
   0xb   :  { %216 = vsyncadd [#allocation3], 4294966784 }
   0xc   :  { %40 = sfence }
   0xd   :  { %s43_s0 = sld [smem:[#allocation2]]  ;;  %v42_v0 = vld [vmem:[#allocation6 + $0x12] ss:$8 sm:$0x3]  ;;  %s223_s28 = smov [#allocation7]  }
   0xe   :  { %s135_s20 = sld [smem:[#allocation2 + $0x1]]  ;;  %v44_v1 = vld [vmem:[#allocation6] ss:$8 sm:$0x3]  ;;  %s122_s29 = sshll.u32 %s223_s28, 4  ;;  %s123_s29 = int_to_ptr.vmem [resolvable:$true] %s122_s29 }
   0xf   :  { %s136_s21 = sld [smem:[#allocation2 + $0x2]]  ;;  %v50_v2 = vld [vmem:[#allocation6 + $0x1] ss:$8 sm:$0x3]  ;;  %s124_s4 = sshll.u32 %s250_s2, 4  ;;  %s125_s4 = int_to_ptr.hbm [resolvable:$true] %s124_s4 }
  0x10   :  { %s137_s22 = sld [smem:[#allocation2 + $0x3]]  ;;  %v56_v4 = vld [vmem:[#allocation6 + $0x2] ss:$8 sm:$0x3] }
  0x11   :  { %s138_s1 = sld [smem:[#allocation2 + $0x4]]  ;;  %v62_v9 = vld [vmem:[#allocation6 + $0x3] ss:$8 sm:$0x3] }
  0x12   :  { %s139_s23 = sld [smem:[#allocation2 + $0x5]]  ;;  %v68_v13 = vld [vmem:[#allocation6 + $0x4] ss:$8 sm:$0x3] }
  0x13   :  { %v45_v3 = vstv %s43_s0  ;;  %s140_s24 = sld [smem:[#allocation2 + $0x6]]  ;;  %v74_v17 = vld [vmem:[#allocation6 + $0x5] ss:$8 sm:$0x3] }
  0x14   :  { %v46_v5 = vmul.f32 %v45_v3, %v44_v1  ;;  %v51_v6 = vstv %s135_s20  ;;  %s141_s25 = sld [smem:[#allocation2 + $0x7]]  ;;  %v80_v21 = vld [vmem:[#allocation6 + $0x6] ss:$8 sm:$0x3] }
  0x15   :  { %v52_v7 = vmul.f32 %v51_v6, %v50_v2  ;;  %v57_v8 = vstv %s136_s21  ;;  %s142_s26 = sld [smem:[#allocation2 + $0x8]]  ;;  %v86_v25 = vld [vmem:[#allocation6 + $0x7] ss:$8 sm:$0x3] }
  0x16   :  { %v47_v10 = vadd.f32 %v46_v5, %v42_v0  ;;  %v58_v11 = vmul.f32 %v57_v8, %v56_v4  ;;  %v63_v12 = vstv %s137_s22  ;;  %s143_s27 = sld [smem:[#allocation2 + $0x9]]  ;;  %v92_v29 = vld [vmem:[#allocation6 + $0x10] ss:$8 sm:$0x3] }
  0x17   :  { %v69_v14 = vstv %s138_s1  ;;  %v64_v16 = vmul.f32 %v63_v12, %v62_v9  ;;  %v98_v33 = vld [vmem:[#allocation6 + $0x11] ss:$8 sm:$0x3] }
  0x18   :  { %v53_v15 = vadd.f32 %v52_v7, %v47_v10  ;;  %v75_v18 = vstv %s139_s23  ;;  %v70_v20 = vmul.f32 %v69_v14, %v68_v13 }
  0x19   :  { %v81_v22 = vstv %s140_s24  ;;  %v76_v24 = vmul.f32 %v75_v18, %v74_v17 }
  0x1a   :  { %v59_v19 = vadd.f32 %v58_v11, %v53_v15  ;;  %v87_v26 = vstv %s141_s25  ;;  %v82_v28 = vmul.f32 %v81_v22, %v80_v21 }
  0x1b   :  { %v93_v30 = vstv %s142_s26  ;;  %v88_v32 = vmul.f32 %v87_v26, %v86_v25 }
  0x1c   :  { %v65_v23 = vadd.f32 %v64_v16, %v59_v19  ;;  %v99_v34 = vstv %s143_s27  ;;  %v94_v36 = vmul.f32 %v93_v30, %v92_v29 }
  0x1d   :  { %v100_v38 = vmul.f32 %v99_v34, %v98_v33 }
  0x1e   :  { %v71_v27 = vadd.f32 %v70_v20, %v65_v23 }
  0x20   :  { %v77_v31 = vadd.f32 %v76_v24, %v71_v27 }
  0x22   :  { %v83_v35 = vadd.f32 %v82_v28, %v77_v31 }
  0x24   :  { %v89_v37 = vadd.f32 %v88_v32, %v83_v35 }
  0x26   :  { %v95_v39 = vadd.f32 %v94_v36, %v89_v37 }
  0x28   :  { %v101_v40 = vadd.f32 %v100_v38, %v95_v39 }
  0x2a   :  { %v103_v41 = vrot.slane %v101_v40, 1 }
  0x2c   :  { %v105_v42 = vmax.f32 %v103_v41, 0.0 }
  0x2e   :  { %v144_v43 = vadd.f32 -1.5, %v105_v42 }
  0x30   :  { %v107_v44 = vmax.f32 %v144_v43, 0.0 }
  0x32   :  { %v108_v45 = vmul.f32 6.5, %v107_v44 }
  0x34   :  { %v145_v46 = vadd.f32 -13.0, %v108_v45 }
  0x36   :  { %v110_v47 = vsub.f32 0.0, %v145_v46 }
  0x38   :  { %v111_v48 = vmul.f32 1.442695, %v110_v47 }
  0x3a   :  { %151 = vpow2.f32 %v111_v48 }
  0x40   :  { %v152_v49 = vpop.eup %151 }
  0x41   :  { %v113_v50 = vadd.f32 1.0, %v152_v49 }
  0x43   :  { %v114_v51 = vmul.f32 %v113_v50, %v101_v40 }
  0x45   :  { %v115_v52 = vmul.f32 %v114_v51, %v101_v40 }
  0x47   :  { %116 = vst [vmem:[#allocation7] sm:$0x1] %v115_v52 }
  0x48   :  { %127 = dma.vmem_to_hbm [thread:$0]  %s123_s29, 16, %s125_s4, [#allocation4]  }
  0x49   :  { %217 = dma.done.wait [#allocation4], 16  }
  0x4a   :  { %218 = vsyncadd [#allocation4], 4294967280 }
  0x4b   :  { %132 = vsyncpa [#allocation3], 1 }
  0x4c   :  { %133 = vsyncpa [#allocation4], 1 }
  0x4d   :  { %134 = vsyncpa [#allocation5], 1 }

</bundles_post_ra>
